<compile_context>
chip_gen: v5e
topology: v5e:2x2
jax: 0.10.0
libtpu: 0.0.40
codegen_flags: <defaults>
</compile_context>

<pallas_src>
import jax
import jax.numpy as jnp
from jax.experimental import pallas as pl
from jax.experimental.pallas import tpu as pltpu


# --------------------------------------------------------------------------
# Kernel 1: per-point MLP (conv k=1 + folded BN + ReLU x3) + online max-pool
# --------------------------------------------------------------------------
def _point_mlp_kernel(x_ref, w1_ref, b1_ref, w2_ref, b2_ref, w3_ref, b3_ref,
                      g_ref, acc_ref):
    tb, tn, cin = x_ref.shape
    x = x_ref[...].reshape(tb * tn, cin)                     # (P, Cin) f32

    # Layer 1: K = Cin (3 or 4) -> VPU broadcast-FMAs, not an MXU push.
    h = b1_ref[...] + x[:, 0:1] * w1_ref[0:1, :]
    for c in range(1, cin):
        h = h + x[:, c:c+1] * w1_ref[c:c+1, :]
    h = jnp.maximum(h, 0.0).astype(jnp.bfloat16)             # (P, 64)

    # Layers 2-3: bf16 operands on the MXU, f32 accumulate.
    h = jnp.dot(h, w2_ref[...], preferred_element_type=jnp.float32) + b2_ref[...]
    h = jnp.maximum(h, 0.0).astype(jnp.bfloat16)             # (P, 128)
    h = jnp.dot(h, w3_ref[...], preferred_element_type=jnp.float32) + b3_ref[...]
    h = jnp.maximum(h, 0.0)                                  # (P, 256) f32

    # MaxPool1d over the point tile, accumulated online across point tiles.
    tile_max = jnp.max(h.reshape(tb, tn, -1), axis=1)        # (TB, 256)

    n_id = pl.program_id(1)

    @pl.when(n_id == 0)
    def _():
        acc_ref[...] = tile_max

    @pl.when(n_id > 0)
    def _():
        acc_ref[...] = jnp.maximum(acc_ref[...], tile_max)

    @pl.when(n_id == pl.num_programs(1) - 1)
    def _():
        g_ref[...] = acc_ref[...]


# --------------------------------------------------------------------------
# Kernel 2: FC head (Linear + folded BN + ReLU x2, Linear, + identity),
# run once for the whole batch; output padded to a lane-dense width.
# --------------------------------------------------------------------------
def _head_kernel(g_ref, fw1_ref, fb1_ref, fw2_ref, fb2_ref,
                 fw3_ref, fb3_ref, eye_ref, out_ref):
    f = jnp.dot(g_ref[...], fw1_ref[...],
                preferred_element_type=jnp.float32) + fb1_ref[...]
    f = jnp.maximum(f, 0.0)                                  # (B, 256)
    f = jnp.dot(f, fw2_ref[...],
                preferred_element_type=jnp.float32) + fb2_ref[...]
    f = jnp.maximum(f, 0.0)                                  # (B, 128)
    f = jnp.dot(f, fw3_ref[...],
                preferred_element_type=jnp.float32) + fb3_ref[...]
    out_ref[...] = f + eye_ref[...]                          # (B, PAD)


# --------------------------------------------------------------------------
# Glue: BN folding, parameter construction, tiling, pallas_call wrappers
# --------------------------------------------------------------------------
def _fold_bn(w, b, gamma, beta, mean, var, eps=1e-5):
    """Fold eval-mode BatchNorm into a preceding (in, out) matmul."""
    s = gamma / jnp.sqrt(var + eps)
    return w * s[None, :], ((b - mean) * s + beta).reshape(1, -1)


def make_params(key, input_dim, output_dim):
    ks = jax.random.split(key, 17)

    def rnd(k, shape, scale=0.1):
        return (scale * jax.random.normal(k, shape)).astype(jnp.float32)

    dd = output_dim * output_dim
    w1, b1 = rnd(ks[0], (input_dim, 64)), rnd(ks[1], (64,))
    w2, b2 = rnd(ks[2], (64, 128)), rnd(ks[3], (128,))
    w3, b3 = rnd(ks[4], (128, 256)), rnd(ks[5], (256,))
    fw1, fb1 = rnd(ks[6], (256, 256)), rnd(ks[7], (256,))
    fw2, fb2 = rnd(ks[8], (256, 128)), rnd(ks[9], (128,))
    fw3, fb3 = rnd(ks[10], (128, dd)), rnd(ks[11], (dd,))

    def bn(k, c):
        k1, k2, k3, k4 = jax.random.split(k, 4)
        gamma = (1.0 + 0.1 * jax.random.normal(k1, (c,))).astype(jnp.float32)
        beta = (0.1 * jax.random.normal(k2, (c,))).astype(jnp.float32)
        mean = (0.1 * jax.random.normal(k3, (c,))).astype(jnp.float32)
        var = jnp.abs(1.0 + 0.1 * jax.random.normal(k4, (c,))).astype(jnp.float32)
        return gamma, beta, mean, var

    w1, b1 = _fold_bn(w1, b1, *bn(ks[12], 64))
    w2, b2 = _fold_bn(w2, b2, *bn(ks[13], 128))
    w3, b3 = _fold_bn(w3, b3, *bn(ks[14], 256))
    fw1, fb1 = _fold_bn(fw1, fb1, *bn(ks[15], 256))
    fw2, fb2 = _fold_bn(fw2, fb2, *bn(ks[16], 128))
    fb3 = fb3.reshape(1, -1)

    return dict(w1=w1, b1=b1, w2=w2, b2=b2, w3=w3, b3=b3,
                fw1=fw1, fb1=fb1, fw2=fw2, fb2=fb2, fw3=fw3, fb3=fb3)


def _batch_tile(b, cap=8):
    if b <= cap:
        return b
    for t in range(cap, 0, -1):
        if b % t == 0 and t % 8 == 0:
            return t
    return b


def _point_tile(n, cap=512):
    """Largest point tile <= cap that divides N and is a multiple of 8."""
    if n <= cap:
        return n
    for t in range(cap, 7, -1):
        if n % t == 0 and t % 8 == 0:
            return t
    return n


def _full_spec(arr):
    nd = arr.ndim
    return pl.BlockSpec(arr.shape, lambda i: (0,) * nd)


def transformation_net(x, params, output_dim):
    """x: (B, N, C_in) float32  ->  (B, output_dim, output_dim) float32."""
    B, N, Cin = x.shape
    DD = output_dim * output_dim
    PAD = max(128, ((DD + 127) // 128) * 128)

    TB = _batch_tile(B)
    TN = _point_tile(N)

    w1, b1 = params["w1"], params["b1"]
    w2 = params["w2"].astype(jnp.bfloat16)
    b2 = params["b2"]
    w3 = params["w3"].astype(jnp.bfloat16)
    b3 = params["b3"]

    # ---- Kernel 1: per-point MLP + max-pool -> pooled features g (B, 256)
    # NOTE: weight index_maps are constant across the grid; Pallas keeps them
    # resident (could additionally use pipeline_mode=pl.Buffered(1) to drop the
    # second buffer, omitted here for portability).
    g = pl.pallas_call(
        _point_mlp_kernel,
        out_shape=jax.ShapeDtypeStruct((B, 256), jnp.float32),
        grid_spec=pltpu.PrefetchScalarGridSpec(
            num_scalar_prefetch=0,
            grid=(B // TB, N // TN),
            in_specs=[
                pl.BlockSpec((TB, TN, Cin), lambda b, n: (b, n, 0)),
                pl.BlockSpec(w1.shape, lambda b, n: (0, 0)),
                pl.BlockSpec(b1.shape, lambda b, n: (0, 0)),
                pl.BlockSpec(w2.shape, lambda b, n: (0, 0)),
                pl.BlockSpec(b2.shape, lambda b, n: (0, 0)),
                pl.BlockSpec(w3.shape, lambda b, n: (0, 0)),
                pl.BlockSpec(b3.shape, lambda b, n: (0, 0)),
            ],
            out_specs=pl.BlockSpec((TB, 256), lambda b, n: (b, 0)),
            scratch_shapes=[pltpu.VMEM((TB, 256), jnp.float32)],
        ),
        compiler_params=pltpu.CompilerParams(
            dimension_semantics=("parallel", "arbitrary")),
    )(x, w1, b1, w2, b2, w3, b3)

    # ---- Kernel 2: FC head once for the whole batch (lane-dense padded out)
    fw3p = jnp.zeros((128, PAD), jnp.float32).at[:, :DD].set(params["fw3"])
    fb3p = jnp.zeros((1, PAD), jnp.float32).at[:, :DD].set(params["fb3"])
    eyep = jnp.zeros((1, PAD), jnp.float32).at[:, :DD].set(
        jnp.eye(output_dim, dtype=jnp.float32).reshape(1, DD))

    head_args = (g, params["fw1"], params["fb1"], params["fw2"], params["fb2"],
                 fw3p, fb3p, eyep)

    out = pl.pallas_call(
        _head_kernel,
        out_shape=jax.ShapeDtypeStruct((B, PAD), jnp.float32),
        grid_spec=pltpu.PrefetchScalarGridSpec(
            num_scalar_prefetch=0,
            grid=(1,),
            in_specs=[_full_spec(a) for a in head_args],
            out_specs=pl.BlockSpec((B, PAD), lambda i: (0, 0)),
        ),
        compiler_params=pltpu.CompilerParams(
            dimension_semantics=("arbitrary",)),
    )(*head_args)

    return out[:, :DD].reshape(B, output_dim, output_dim)


# --------------------------------------------------------------------------
# References
# --------------------------------------------------------------------------
def _reference_f32(x, p, output_dim):
    h = jnp.maximum(x @ p["w1"] + p["b1"], 0.0)
    h = jnp.maximum(h @ p["w2"] + p["b2"], 0.0)
    h = jnp.maximum(h @ p["w3"] + p["b3"], 0.0)
    g = jnp.max(h, axis=1)
    f = jnp.maximum(g @ p["fw1"] + p["fb1"], 0.0)
    f = jnp.maximum(f @ p["fw2"] + p["fb2"], 0.0)
    f = f @ p["fw3"] + p["fb3"]
    eye = jnp.eye(output_dim, dtype=jnp.float32).reshape(1, -1)
    return (f + eye).reshape(-1, output_dim, output_dim)


def _reference_bf16(x, p, output_dim):
    """Mirrors the kernel's bf16 MXU quantization for a tight check."""
    bf = jnp.bfloat16
    h = jnp.maximum(x @ p["w1"] + p["b1"], 0.0).astype(bf)
    h = jnp.dot(h, p["w2"].astype(bf),
                preferred_element_type=jnp.float32) + p["b2"]
    h = jnp.maximum(h, 0.0).astype(bf)
    h = jnp.dot(h, p["w3"].astype(bf),
                preferred_element_type=jnp.float32) + p["b3"]
    h = jnp.maximum(h, 0.0)
    g = jnp.max(h, axis=1)
    f = jnp.maximum(g @ p["fw1"] + p["fb1"], 0.0)
    f = jnp.maximum(f @ p["fw2"] + p["fb2"], 0.0)
    f = f @ p["fw3"] + p["fb3"]
    eye = jnp.eye(output_dim, dtype=jnp.float32).reshape(1, -1)
    return (f + eye).reshape(-1, output_dim, output_dim)


if __name__ == "__main__":
    B, N, INPUT_DIM, OUTPUT_DIM = 2, 16, 4, 4

    key = jax.random.PRNGKey(0)
    kx, kp = jax.random.split(key)
    x = jax.random.normal(kx, (B, N, INPUT_DIM), dtype=jnp.float32)
    params = make_params(kp, INPUT_DIM, OUTPUT_DIM)

    out = transformation_net(x, params, OUTPUT_DIM)
    out = jax.block_until_ready(out)
    assert out.shape == (B, OUTPUT_DIM, OUTPUT_DIM)

    ref_q = _reference_bf16(x, params, OUTPUT_DIM)   # same bf16 quantization
    ref_f = _reference_f32(x, params, OUTPUT_DIM)    # pure f32 semantics
    assert jnp.allclose(out, ref_q, atol=2e-3, rtol=2e-3), \
        f"max |err| vs bf16 ref = {float(jnp.max(jnp.abs(out - ref_q)))}"
    assert jnp.allclose(out, ref_f, atol=5e-2, rtol=5e-2), \
        f"max |err| vs f32 ref = {float(jnp.max(jnp.abs(out - ref_f)))}"

    print("KERNEL_OK")
</pallas_src>

<mosaic_0001>
module attributes {stable_mosaic.version = 11 : i64} {
  func.func @_point_mlp_kernel(%arg0: i32, %arg1: i32, %arg2: memref<2x16x4xf32, #tpu.memory_space<vmem>>, %arg3: memref<4x64xf32, #tpu.memory_space<vmem>>, %arg4: memref<1x64xf32, #tpu.memory_space<vmem>>, %arg5: memref<64x128xbf16, #tpu.memory_space<vmem>>, %arg6: memref<1x128xf32, #tpu.memory_space<vmem>>, %arg7: memref<128x256xbf16, #tpu.memory_space<vmem>>, %arg8: memref<1x256xf32, #tpu.memory_space<vmem>>, %arg9: memref<2x256xf32, #tpu.memory_space<vmem>>, %arg10: memref<2x256xf32, #tpu.memory_space<vmem>>) attributes {dimension_semantics = [#tpu.dimension_semantics<parallel>, #tpu.dimension_semantics<arbitrary>], iteration_bounds = array<i64: 1, 1>, scalar_prefetch = 0 : i64, scratch_operands = 1 : i64, tpu.core_type = #tpu.core_type<tc>, window_params = [{transform_indices = @transform_0, window_bounds = array<i64: 2, 16, 4>}, {pipeline_mode = #tpu.pipeline_mode<synchronous>, transform_indices = @transform_1, window_bounds = array<i64: 4, 64>}, {pipeline_mode = #tpu.pipeline_mode<synchronous>, transform_indices = @transform_2, window_bounds = array<i64: 1, 64>}, {pipeline_mode = #tpu.pipeline_mode<synchronous>, transform_indices = @transform_3, window_bounds = array<i64: 64, 128>}, {pipeline_mode = #tpu.pipeline_mode<synchronous>, transform_indices = @transform_4, window_bounds = array<i64: 1, 128>}, {pipeline_mode = #tpu.pipeline_mode<synchronous>, transform_indices = @transform_5, window_bounds = array<i64: 128, 256>}, {pipeline_mode = #tpu.pipeline_mode<synchronous>, transform_indices = @transform_6, window_bounds = array<i64: 1, 256>}, {transform_indices = @transform_7, window_bounds = array<i64: 2, 256>}]} {
    %c0 = arith.constant 0 : index
    %c0_0 = arith.constant 0 : index
    %c0_1 = arith.constant 0 : index
    %0 = vector.load %arg2[%c0, %c0_0, %c0_1] : memref<2x16x4xf32, #tpu.memory_space<vmem>>, vector<2x16x4xf32>
    %1 = vector.shape_cast %0 : vector<2x16x4xf32> to vector<32x4xf32>
    %c0_2 = arith.constant 0 : index
    %c0_3 = arith.constant 0 : index
    %2 = vector.load %arg4[%c0_2, %c0_3] : memref<1x64xf32, #tpu.memory_space<vmem>>, vector<1x64xf32>
    %3 = vector.extract_strided_slice %1 {offsets = [0, 0], sizes = [32, 1], strides = [1, 1]} : vector<32x4xf32> to vector<32x1xf32>
    %c0_4 = arith.constant 0 : index
    %c0_5 = arith.constant 0 : index
    %4 = vector.load %arg3[%c0_4, %c0_5] : memref<4x64xf32, #tpu.memory_space<vmem>>, vector<1x64xf32>
    %5 = vector.broadcast %3 : vector<32x1xf32> to vector<32x64xf32>
    %6 = vector.broadcast %4 : vector<1x64xf32> to vector<32x64xf32>
    %7 = arith.mulf %5, %6 : vector<32x64xf32>
    %8 = vector.broadcast %2 : vector<1x64xf32> to vector<32x64xf32>
    %9 = arith.addf %8, %7 : vector<32x64xf32>
    %10 = vector.extract_strided_slice %1 {offsets = [0, 1], sizes = [32, 1], strides = [1, 1]} : vector<32x4xf32> to vector<32x1xf32>
    %c1 = arith.constant 1 : index
    %c0_6 = arith.constant 0 : index
    %11 = vector.load %arg3[%c1, %c0_6] : memref<4x64xf32, #tpu.memory_space<vmem>>, vector<1x64xf32>
    %12 = vector.broadcast %10 : vector<32x1xf32> to vector<32x64xf32>
    %13 = vector.broadcast %11 : vector<1x64xf32> to vector<32x64xf32>
    %14 = arith.mulf %12, %13 : vector<32x64xf32>
    %15 = arith.addf %9, %14 : vector<32x64xf32>
    %16 = vector.extract_strided_slice %1 {offsets = [0, 2], sizes = [32, 1], strides = [1, 1]} : vector<32x4xf32> to vector<32x1xf32>
    %c2 = arith.constant 2 : index
    %c0_7 = arith.constant 0 : index
    %17 = vector.load %arg3[%c2, %c0_7] : memref<4x64xf32, #tpu.memory_space<vmem>>, vector<1x64xf32>
    %18 = vector.broadcast %16 : vector<32x1xf32> to vector<32x64xf32>
    %19 = vector.broadcast %17 : vector<1x64xf32> to vector<32x64xf32>
    %20 = arith.mulf %18, %19 : vector<32x64xf32>
    %21 = arith.addf %15, %20 : vector<32x64xf32>
    %22 = vector.extract_strided_slice %1 {offsets = [0, 3], sizes = [32, 1], strides = [1, 1]} : vector<32x4xf32> to vector<32x1xf32>
    %c3 = arith.constant 3 : index
    %c0_8 = arith.constant 0 : index
    %23 = vector.load %arg3[%c3, %c0_8] : memref<4x64xf32, #tpu.memory_space<vmem>>, vector<1x64xf32>
    %24 = vector.broadcast %22 : vector<32x1xf32> to vector<32x64xf32>
    %25 = vector.broadcast %23 : vector<1x64xf32> to vector<32x64xf32>
    %26 = arith.mulf %24, %25 : vector<32x64xf32>
    %27 = arith.addf %21, %26 : vector<32x64xf32>
    %cst = arith.constant 0.000000e+00 : f32
    %28 = vector.broadcast %cst : f32 to vector<32x64xf32>
    %29 = arith.maximumf %27, %28 : vector<32x64xf32>
    %30 = arith.truncf %29 : vector<32x64xf32> to vector<32x64xbf16>
    %c0_9 = arith.constant 0 : index
    %c0_10 = arith.constant 0 : index
    %31 = vector.load %arg5[%c0_9, %c0_10] : memref<64x128xbf16, #tpu.memory_space<vmem>>, vector<64x128xbf16>
    %cst_11 = arith.constant dense<0.000000e+00> : vector<32x128xf32>
    %32 = tpu.matmul %30, %31, %cst_11 {dimension_numbers = #tpu.dot_dimension_numbers<[1], [0], [0], [1], [0, 0, 1, 1], [], []>} : vector<32x64xbf16>, vector<64x128xbf16>, vector<32x128xf32> -> vector<32x128xf32>
    %c0_12 = arith.constant 0 : index
    %c0_13 = arith.constant 0 : index
    %33 = vector.load %arg6[%c0_12, %c0_13] : memref<1x128xf32, #tpu.memory_space<vmem>>, vector<1x128xf32>
    %34 = vector.broadcast %33 : vector<1x128xf32> to vector<32x128xf32>
    %35 = arith.addf %32, %34 : vector<32x128xf32>
    %cst_14 = arith.constant 0.000000e+00 : f32
    %36 = vector.broadcast %cst_14 : f32 to vector<32x128xf32>
    %37 = arith.maximumf %35, %36 : vector<32x128xf32>
    %38 = arith.truncf %37 : vector<32x128xf32> to vector<32x128xbf16>
    %c0_15 = arith.constant 0 : index
    %c0_16 = arith.constant 0 : index
    %39 = vector.load %arg7[%c0_15, %c0_16] : memref<128x256xbf16, #tpu.memory_space<vmem>>, vector<128x256xbf16>
    %cst_17 = arith.constant dense<0.000000e+00> : vector<32x256xf32>
    %40 = tpu.matmul %38, %39, %cst_17 {dimension_numbers = #tpu.dot_dimension_numbers<[1], [0], [0], [1], [0, 0, 1, 1], [], []>} : vector<32x128xbf16>, vector<128x256xbf16>, vector<32x256xf32> -> vector<32x256xf32>
    %c0_18 = arith.constant 0 : index
    %c0_19 = arith.constant 0 : index
    %41 = vector.load %arg8[%c0_18, %c0_19] : memref<1x256xf32, #tpu.memory_space<vmem>>, vector<1x256xf32>
    %42 = vector.broadcast %41 : vector<1x256xf32> to vector<32x256xf32>
    %43 = arith.addf %40, %42 : vector<32x256xf32>
    %cst_20 = arith.constant 0.000000e+00 : f32
    %44 = vector.broadcast %cst_20 : f32 to vector<32x256xf32>
    %45 = arith.maximumf %43, %44 : vector<32x256xf32>
    %46 = vector.shape_cast %45 : vector<32x256xf32> to vector<2x16x256xf32>
    %cst_21 = arith.constant dense<0xFF800000> : vector<2x256xf32>
    %47 = vector.multi_reduction <maximumf>, %46, %cst_21 [1] : vector<2x16x256xf32> to vector<2x256xf32>
    %c0_i32 = arith.constant 0 : i32
    %48 = arith.cmpi eq, %arg1, %c0_i32 : i32
    %49 = arith.extui %48 : i1 to i32
    %c0_i32_22 = arith.constant 0 : i32
    %50 = arith.cmpi ne, %49, %c0_i32_22 : i32
    scf.if %50 {
      %c0_27 = arith.constant 0 : index
      %c0_28 = arith.constant 0 : index
      %57 = vector.load %arg10[%c0_27, %c0_28] : memref<2x256xf32, #tpu.memory_space<vmem>>, vector<2x256xf32>
      tpu.vector_store %arg10[%c0_27, %c0_28], %47 {strides = array<i32>} : memref<2x256xf32, #tpu.memory_space<vmem>>, vector<2x256xf32>,
    } else {
    }
    %c0_i32_23 = arith.constant 0 : i32
    %51 = arith.cmpi sgt, %arg1, %c0_i32_23 : i32
    %52 = arith.extui %51 : i1 to i32
    %c0_i32_24 = arith.constant 0 : i32
    %53 = arith.cmpi ne, %52, %c0_i32_24 : i32
    scf.if %53 {
      %c0_27 = arith.constant 0 : index
      %c0_28 = arith.constant 0 : index
      %57 = vector.load %arg10[%c0_27, %c0_28] : memref<2x256xf32, #tpu.memory_space<vmem>>, vector<2x256xf32>
      %58 = arith.maximumf %57, %47 : vector<2x256xf32>
      %c0_29 = arith.constant 0 : index
      %c0_30 = arith.constant 0 : index
      %59 = vector.load %arg10[%c0_29, %c0_30] : memref<2x256xf32, #tpu.memory_space<vmem>>, vector<2x256xf32>
      tpu.vector_store %arg10[%c0_29, %c0_30], %58 {strides = array<i32>} : memref<2x256xf32, #tpu.memory_space<vmem>>, vector<2x256xf32>,
    } else {
    }
    %c0_i32_25 = arith.constant 0 : i32
    %54 = arith.cmpi eq, %arg1, %c0_i32_25 : i32
    %55 = arith.extui %54 : i1 to i32
    %c0_i32_26 = arith.constant 0 : i32
    %56 = arith.cmpi ne, %55, %c0_i32_26 : i32
    scf.if %56 {
      %c0_27 = arith.constant 0 : index
      %c0_28 = arith.constant 0 : index
      %57 = vector.load %arg10[%c0_27, %c0_28] : memref<2x256xf32, #tpu.memory_space<vmem>>, vector<2x256xf32>
      %c0_29 = arith.constant 0 : index
      %c0_30 = arith.constant 0 : index
      %58 = vector.load %arg9[%c0_29, %c0_30] : memref<2x256xf32, #tpu.memory_space<vmem>>, vector<2x256xf32>
      tpu.vector_store %arg9[%c0_29, %c0_30], %57 {strides = array<i32>} : memref<2x256xf32, #tpu.memory_space<vmem>>, vector<2x256xf32>,
    } else {
    }
    return
  }
  func.func @transform_0(%arg0: i32, %arg1: i32) -> (i32, i32, i32) {
    %c0_i32 = arith.constant 0 : i32
    %c0_i32_0 = arith.constant 0 : i32
    return %arg0, %arg1, %c0_i32 : i32, i32, i32
  }
  func.func @transform_1(%arg0: i32, %arg1: i32) -> (i32, i32) {
    %c0_i32 = arith.constant 0 : i32
    %c0_i32_0 = arith.constant 0 : i32
    %c0_i32_1 = arith.constant 0 : i32
    return %c0_i32, %c0_i32_0 : i32, i32
  }
  func.func @transform_2(%arg0: i32, %arg1: i32) -> (i32, i32) {
    %c0_i32 = arith.constant 0 : i32
    %c0_i32_0 = arith.constant 0 : i32
    %c0_i32_1 = arith.constant 0 : i32
    return %c0_i32, %c0_i32_0 : i32, i32
  }
  func.func @transform_3(%arg0: i32, %arg1: i32) -> (i32, i32) {
    %c0_i32 = arith.constant 0 : i32
    %c0_i32_0 = arith.constant 0 : i32
    %c0_i32_1 = arith.constant 0 : i32
    return %c0_i32, %c0_i32_0 : i32, i32
  }
  func.func @transform_4(%arg0: i32, %arg1: i32) -> (i32, i32) {
    %c0_i32 = arith.constant 0 : i32
    %c0_i32_0 = arith.constant 0 : i32
    %c0_i32_1 = arith.constant 0 : i32
    return %c0_i32, %c0_i32_0 : i32, i32
  }
  func.func @transform_5(%arg0: i32, %arg1: i32) -> (i32, i32) {
    %c0_i32 = arith.constant 0 : i32
    %c0_i32_0 = arith.constant 0 : i32
    %c0_i32_1 = arith.constant 0 : i32
    return %c0_i32, %c0_i32_0 : i32, i32
  }
  func.func @transform_6(%arg0: i32, %arg1: i32) -> (i32, i32) {
    %c0_i32 = arith.constant 0 : i32
    %c0_i32_0 = arith.constant 0 : i32
    %c0_i32_1 = arith.constant 0 : i32
    return %c0_i32, %c0_i32_0 : i32, i32
  }
  func.func @transform_7(%arg0: i32, %arg1: i32) -> (i32, i32) {
    %c0_i32 = arith.constant 0 : i32
    %c0_i32_0 = arith.constant 0 : i32
    return %arg0, %c0_i32 : i32, i32
  }
}

</mosaic_0001>

<bundles_post_ra>
// kernel: tpu_custom_call.1
= control target key start
LH: loop header
LB: loop body
LE: loop exit
PB: predicated region body
PF: predicated region fallthrough
CT: control target
= control target key end

     0   :  { %12 = vsyncpa [#allocation4], 0  ;;  %s814_s0 = inlined_call_operand.vmem [shape: f32[2,16,4], index: 0, kind: input, shape index: {}]   ;;  %s815_s1 = inlined_call_operand.vmem [shape: f32[4,64], index: 1, kind: input, shape index: {}]   ;;  %s816_s2 = inlined_call_operand.vmem [shape: f32[1,64], index: 2, kind: input, shape index: {}]   ;;  %s817_s3 = inlined_call_operand.vmem [shape: bf16[64,128], index: 3, kind: input, shape index: {}]   ;;  %s818_s4 = inlined_call_operand.vmem [shape: f32[1,128], index: 4, kind: input, shape index: {}]   ;;  %s819_s5 = inlined_call_operand.hbm [shape: bf16[128,256], index: 5, kind: input, shape index: {}]   ;;  %s820_s6 = inlined_call_operand.vmem [shape: f32[1,256], index: 6, kind: input, shape index: {}]   ;;  %s821_s7 = inlined_call_operand.hbm [shape: f32[2,256], index: 7, kind: output, shape index: {}]  }
   0x1   :  { %13 = vsyncpa [#allocation5], 0  ;;  %s28_s26 = sshll.u32 %s819_s5, 4  ;;  %s680_s27 = smov [#allocation3]   ;;  %s29_s26 = int_to_ptr.hbm [resolvable:$true] %s28_s26 }
   0x2   :  { %s30_s28 = sshll.u32 %s680_s27, 4  ;;  %s681_s29 = smov 128   ;;  %s31_s28 = int_to_ptr.vmem [resolvable:$true] %s30_s28 }
   0x3   :  { %s682_s30 = smov 8  }
   0x4   :  { %36 = dma.hbm_to_vmem [thread:$0]  %s29_s26, 2048, %s31_s28, [#allocation4], %s681_s29, %s681_s29, %s682_s30  }
   0x5   :  { %676 = dma.done.wait [#allocation4], 2048  }
   0x6   :  { %677 = vsyncadd [#allocation4], 4294965248  ;;  %v683_v0 = vmov 1   ;;  %v684_v1 = vmov 0   ;;  %v685_v2 = vmov 2   ;;  %v44_v3 = vld [vmem:[%s814_s0] sm:$0xff] }
   0x7   :  { %609 = vset.pattern.permute.xlu1 %v683_v0  ;;  %608 = vset.pattern.permute.xlu0 %v684_v1  ;;  %v45_v4 = vld [vmem:[%s814_s0 + $0x8] sm:$0xff]  ;;  %v686_v5 = vmov 3   ;;  %v46_v6 = vld [vmem:[%s814_s0 + $0x10] sm:$0xff]  ;;  %v47_v7 = vld [vmem:[%s814_s0 + $0x18] sm:$0xff]  ;;  %vm202_vm0 = vcmask 523264   ;;  %vm420_vm1 = vcmask 1041408  }
   0x8   :  { %610 = vset.pattern.permute.xlu2 %v685_v2  ;;  %84 = vperm.xlu1 %609, %v44_v3   ;;  %v575_v8 = vld [vmem:[%s817_s3 + $0x18] sm:$0xff]  ;;  %v574_v9 = vld [vmem:[%s817_s3 + $0x10] sm:$0xff]  ;;  %v573_v10 = vld [vmem:[%s817_s3 + $0x8] sm:$0xff]  ;;  %vm428_vm2 = vcmask 1041409   ;;  %vm430_vm3 = vcmask 1043459   ;;  %vm432_vm4 = vcmask 1045509  }
   0x9   :  { %52 = vperm.xlu0 %608, %v44_v3   ;;  %110 = vperm.xlu2 %610, %v44_v3   ;;  %v572_v12 = vld [vmem:[%s817_s3] sm:$0xff]  ;;  %v566_v43 = vld [vmem:[#allocation3 + $0x70] sm:$0xf]  ;;  %v591_v44 = vld [vmem:[#allocation3 + $0x74] sm:$0xf0]  ;;  %vm434_vm5 = vcmask 1047559  }
   0xa   :  { %213 = vmatpush.bf16.msra.mxu0 %v575_v8  ;;  %v758_v16 = vld [vmem:[%s815_s1] ss:$0 sm:$0xff]  ;;  %v771_v20 = vld [vmem:[%s815_s1 + $0x1] ss:$0 sm:$0xff]  ;;  %v779_v26 = vld [vmem:[%s815_s1 + $0x2] ss:$0 sm:$0xff]  ;;  %v567_v48 = vor.u32 %v591_v44, %v566_v43 }
   0xb   :  { %v763_v17 = vld [vmem:[%s816_s2] ss:$0 sm:$0xff]  ;;  %v786_v31 = vld [vmem:[%s815_s1 + $0x3] ss:$0 sm:$0xff]  ;;  %v590_v45 = vld [vmem:[#allocation3 + $0x74] sm:$0xf] }
   0xc   :  { %v568_v49 = vld [vmem:[#allocation3 + $0x78] sm:$0xf0]  ;;  %v558_v50 = vld [vmem:[#allocation3 + $0x60] sm:$0xf]  ;;  %v589_v52 = vld [vmem:[#allocation3 + $0x64] sm:$0xf0]  ;;  %336 = vmatpush.bf16.msra.mxu1 %v567_v48  ;;  %592 = vmatpush.bf16.msra.mxu3 %v567_v48 }
   0xd   :  { %v571_v51 = vor.u32 %v590_v45, %v568_v49  ;;  %v588_v53 = vld [vmem:[#allocation3 + $0x64] sm:$0xf]  ;;  %v560_v54 = vld [vmem:[#allocation3 + $0x68] sm:$0xf0]  ;;  %v559_v56 = vor.u32 %v589_v52, %v558_v50  ;;  %v550_v58 = vld [vmem:[#allocation3 + $0x50] sm:$0xf] }
   0xe   :  { %214 = vmatpush.bf16.msra.mxu0 %v574_v9  ;;  %v563_v57 = vor.u32 %v588_v53, %v560_v54  ;;  %v587_v59 = vld [vmem:[#allocation3 + $0x54] sm:$0xf0]  ;;  %v586_v61 = vld [vmem:[#allocation3 + $0x54] sm:$0xf]  ;;  %v552_v62 = vld [vmem:[#allocation3 + $0x58] sm:$0xf0] }
   0xf   :  { %355 = vmatpush.bf16.msra.mxu2 %v571_v51  ;;  %v518_v43 = vld [vmem:[#allocation3 + $0x10] sm:$0xf]  ;;  %v579_v44 = vld [vmem:[#allocation3 + $0x14] sm:$0xf0]  ;;  %v578_v45 = vld [vmem:[#allocation3 + $0x14] sm:$0xf] }
  0x10   :  { %88 = vperm.xlu1 %609, %v45_v4   ;;  %337 = vmatpush.bf16.msra.mxu1 %v559_v56  ;;  %v510_v49 = vld [vmem:[#allocation3] sm:$0xf]  ;;  %v577_v50 = vld [vmem:[#allocation3 + $0x4] sm:$0xf0]  ;;  %v576_v51 = vld [vmem:[#allocation3 + $0x4] sm:$0xf] }
  0x11   :  { %57 = vperm.xlu0 %608, %v45_v4   ;;  %114 = vperm.xlu2 %610, %v45_v4   ;;  %v511_v52 = vor.u32 %v577_v50, %v510_v49  ;;  %v512_v53 = vld [vmem:[#allocation3 + $0x8] sm:$0xf0]  ;;  %s480_s11 = sshll.u32 %s821_s7, 4  ;;  %s481_s11 = int_to_ptr.hbm [resolvable:$true] %s480_s11 }
  0x12   :  { %215 = vmatpush.bf16.msra.mxu0 %v573_v10  ;;  %593 = vmatpush.bf16.msra.mxu3 %v559_v56  ;;  %v515_v54 = vor.u32 %v576_v51, %v512_v53  ;;  %v627_v56 = vld [vmem:[%s818_s4] ss:$0 sm:$0xff] }
  0x13   :  { %356 = vmatpush.bf16.msra.mxu2 %v563_v57 }
  0x16   :  { %216 = vmatpush.bf16.msra.mxu0 %v572_v12 }
  0x18   :  { %612 = vset.pattern.permute.xlu1 %v686_v5 }
  0x19   :  { %611 = vset.pattern.permute.xlu0 %v686_v5  ;;  %140 = vperm.xlu1 %612, %v45_v4   ;;  %v585_v4 = vld [vmem:[#allocation3 + $0x44] sm:$0xf0] }
  0x1a   :  { %136 = vperm.xlu0 %611, %v44_v3   ;;  %613 = vset.pattern.permute.xlu2 %v684_v1  ;;  %v542_v3 = vld [vmem:[#allocation3 + $0x40] sm:$0xf] }
  0x1b   :  { %62 = vperm.xlu2 %613, %v46_v6   ;;  %v543_v8 = vor.u32 %v585_v4, %v542_v3 }
  0x21   :  { %614 = vset.pattern.permute.xlu1 %v684_v1 }
  0x22   :  { %616 = vset.pattern.permute.xlu0 %v683_v0  ;;  %67 = vperm.xlu1 %614, %v47_v7  }
  0x23   :  { %96 = vperm.xlu0 %616, %v47_v7   ;;  %615 = vset.pattern.permute.xlu2 %v683_v0  ;;  %v551_v0 = vor.u32 %v587_v59, %v550_v58 }
  0x24   :  { %92 = vperm.xlu2 %615, %v46_v6  }
  0x25   :  { %338 = vmatpush.bf16.msra.mxu1 %v551_v0  ;;  %594 = vmatpush.bf16.msra.mxu3 %v551_v0 }
  0x29   :  { %339 = vmatpush.bf16.msra.mxu1 %v543_v8  ;;  %595 = vmatpush.bf16.msra.mxu3 %v543_v8  ;;  %v250_v8 = vld [vmem:[%s820_s6] sm:$0x3]  ;;  %s687_s6 = smov [#allocation6]  }
  0x2a   :  { %617 = vset.pattern.permute.xlu1 %v685_v2  ;;  %s478_s9 = sshll.u32 %s687_s6, 4  ;;  %s479_s9 = int_to_ptr.vmem [resolvable:$true] %s478_s9 }
  0x2b   :  { %621 = vset.pattern.permute.xlu0 %v686_v5  ;;  %118 = vperm.xlu1 %617, %v46_v6  }
  0x2c   :  { %618 = vset.pattern.permute.xlu2 %v685_v2  ;;  %v555_v2 = vor.u32 %v586_v61, %v552_v62 }
  0x2d   :  { %122 = vperm.xlu2 %618, %v47_v7  }
  0x2e   :  { %357 = vmatpush.bf16.msra.mxu2 %v555_v2 }
  0x33   :  { %619 = vset.pattern.permute.xlu1 %v686_v5 }
  0x34   :  { %144 = vperm.xlu1 %619, %v46_v6   ;;  %v584_v6 = vld [vmem:[#allocation3 + $0x44] sm:$0xf] }
  0x35   :  { %620 = vset.pattern.permute.xlu2 %v686_v5 }
  0x36   :  { %148 = vperm.xlu2 %620, %v47_v7   ;;  %v544_v7 = vld [vmem:[#allocation3 + $0x48] sm:$0xf0] }
  0x63   :  { %v111_v11 = vpop.permute.xlu2 %110 }
  0x64   :  { %v126_v32 = vmul.f32 %v779_v26, %v111_v11  ;;  %v547_v11 = vor.u32 %v584_v6, %v544_v7 }
  0x66   :  { %358 = vmatpush.bf16.msra.mxu2 %v547_v11 }
  0x6b   :  { %v115_v13 = vpop.permute.xlu2 %114 }
  0x6c   :  { %v127_v33 = vmul.f32 %v779_v26, %v115_v13 }
  0x75   :  { %v766_v19 = vpop.permute.xlu2 %62 }
  0x76   :  { %v73_v12 = vmul.f32 %v758_v16, %v766_v19 }
  0x7a   :  { %v85_v14 = vpop.permute.xlu1 %84 }
  0x7b   :  { %v53_v15 = vpop.permute.xlu0 %52  ;;  %v100_v27 = vmul.f32 %v771_v20, %v85_v14 }
  0x7c   :  { %v71_v18 = vmul.f32 %v758_v16, %v53_v15 }
  0x7e   :  { %v78_v24 = vadd.f32 %v763_v17, %v71_v18  ;;  %v93_v36 = vpop.permute.xlu2 %92 }
  0x80   :  { %v104_v29 = vadd.f32 %v100_v27, %v78_v24 }
  0x82   :  { %v89_v21 = vpop.permute.xlu1 %88  ;;  %v130_v39 = vadd.f32 %v126_v32, %v104_v29 }
  0x83   :  { %v58_v22 = vpop.permute.xlu0 %57  ;;  %v101_v28 = vmul.f32 %v771_v20, %v89_v21  ;;  %v80_v21 = vadd.f32 %v763_v17, %v73_v12 }
  0x84   :  { %v72_v23 = vmul.f32 %v758_v16, %v58_v22  ;;  %v102_v22 = vmul.f32 %v771_v20, %v93_v36 }
  0x86   :  { %v79_v25 = vadd.f32 %v763_v17, %v72_v23  ;;  %v106_v27 = vadd.f32 %v102_v22, %v80_v21 }
  0x87   :  { %v123_v63 = vpop.permute.xlu2 %122 }
  0x88   :  { %v105_v30 = vadd.f32 %v101_v28, %v79_v25  ;;  %v129_v14 = vmul.f32 %v779_v26, %v123_v63 }
  0x8a   :  { %v131_v37 = vadd.f32 %v127_v33, %v105_v30 }
  0x8b   :  { %v141_v34 = vpop.permute.xlu1 %140 }
  0x8c   :  { %v137_v35 = vpop.permute.xlu0 %136  ;;  %v153_v38 = vmul.f32 %v786_v31, %v141_v34 }
  0x8d   :  { %v152_v40 = vmul.f32 %v786_v31, %v137_v35  ;;  %v583_v35 = vld [vmem:[#allocation3 + $0x34] sm:$0xf0] }
  0x8e   :  { %v157_v41 = vadd.f32 %v153_v38, %v131_v37  ;;  %v536_v37 = vld [vmem:[#allocation3 + $0x38] sm:$0xf0] }
  0x8f   :  { %v156_v42 = vadd.f32 %v152_v40, %v130_v39  ;;  %v581_v39 = vld [vmem:[#allocation3 + $0x24] sm:$0xf0]  ;;  %v580_v40 = vld [vmem:[#allocation3 + $0x24] sm:$0xf] }
  0x90   :  { %v161_v46 = vmax.f32 %v157_v41, 0.0  ;;  %v149_v18 = vpop.permute.xlu2 %148 }
  0x91   :  { %v160_v47 = vmax.f32 %v156_v42, 0.0  ;;  %v155_v24 = vmul.f32 %v786_v31, %v149_v18 }
  0x93   :  { %v164_v55 = vpack.c.bf16 %v161_v46, %v160_v47  ;;  %v519_v46 = vor.u32 %v579_v44, %v518_v43  ;;  %v520_v47 = vld [vmem:[#allocation3 + $0x18] sm:$0xf0] }
  0x94   :  { %v68_v60 = vpop.permute.xlu1 %67  ;;  %v523_v48 = vor.u32 %v578_v45, %v520_v47 }
  0x95   :  { %506 = vmatmul.msk.bf16.vlgmr.msra.gmra.mxu0 %vm202_vm0, %v164_v55  ;;  %v74_v1 = vmul.f32 %v758_v16, %v68_v60  ;;  %v97_v5 = vpop.permute.xlu0 %96 }
  0x96   :  { %v103_v10 = vmul.f32 %v771_v20, %v97_v5  ;;  %v582_v20 = vld [vmem:[#allocation3 + $0x34] sm:$0xf] }
  0x97   :  { %v81_v9 = vadd.f32 %v763_v17, %v74_v1  ;;  %v534_v17 = vld [vmem:[#allocation3 + $0x30] sm:$0xf]  ;;  %v539_v38 = vor.u32 %v582_v20, %v536_v37 }
  0x98   :  { %v535_v36 = vor.u32 %v583_v35, %v534_v17 }
  0x99   :  { %v107_v15 = vadd.f32 %v103_v10, %v81_v9  ;;  %359 = vmatpush.bf16.msra.mxu2 %v539_v38  ;;  %v253_v10 = vperm.slane %v250_v8, 1 }
  0x9a   :  { %340 = vmatpush.bf16.msra.mxu1 %v535_v36  ;;  %596 = vmatpush.bf16.msra.mxu3 %v535_v36 }
  0x9b   :  { %v133_v23 = vadd.f32 %v129_v14, %v107_v15  ;;  %v252_v15 = vperm.slane %v250_v8, 0 }
  0x9d   :  { %v119_v13 = vpop.permute.xlu1 %118  ;;  %v159_v16 = vadd.f32 %v155_v24, %v133_v23 }
  0x9e   :  { %v128_v25 = vmul.f32 %v779_v26, %v119_v13  ;;  %v526_v26 = vld [vmem:[#allocation3 + $0x20] sm:$0xf] }
  0x9f   :  { %v163_v32 = vmax.f32 %v159_v16, 0.0  ;;  %v527_v41 = vor.u32 %v581_v39, %v526_v26 }
  0xa0   :  { %v132_v19 = vadd.f32 %v128_v25, %v106_v27 }
  0xa1   :  { %341 = vmatpush.bf16.msra.mxu1 %v527_v41  ;;  %597 = vmatpush.bf16.msra.mxu3 %v527_v41 }
  0xa5   :  { %342 = vmatpush.bf16.msra.mxu1 %v519_v46  ;;  %598 = vmatpush.bf16.msra.mxu3 %v519_v46 }
  0xa6   :  { %v145_v28 = vpop.permute.xlu1 %144 }
  0xa7   :  { %v154_v29 = vmul.f32 %v786_v31, %v145_v28  ;;  %v528_v31 = vld [vmem:[#allocation3 + $0x28] sm:$0xf0] }
  0xa8   :  { %v531_v42 = vor.u32 %v580_v40, %v528_v31 }
  0xa9   :  { %v158_v30 = vadd.f32 %v154_v29, %v132_v19  ;;  %343 = vmatpush.bf16.msra.mxu1 %v511_v52  ;;  %599 = vmatpush.bf16.msra.mxu3 %v511_v52 }
  0xaa   :  { %360 = vmatpush.bf16.msra.mxu2 %v531_v42 }
  0xab   :  { %v162_v33 = vmax.f32 %v158_v30, 0.0 }
  0xad   :  { %v165_v34 = vpack.c.bf16 %v163_v32, %v162_v33 }
  0xae   :  { %361 = vmatpush.bf16.msra.mxu2 %v523_v48 }
  0xaf   :  { %507 = vmatmul.msk.bf16.gmra.mxu0 %vm202_vm0, %v165_v34 }
  0xb2   :  { %362 = vmatpush.bf16.msra.mxu2 %v515_v54 }
 0x112   :  { %v218_v55 = vpop.f32.mrf.mxu0 }
 0x113   :  { %v219_v57 = vadd.f32 %v627_v56, %v218_v55 }
 0x115   :  { %v228_v60 = vmax.f32 %v219_v57, 0.0 }
 0x11a   :  { %v220_v58 = vpop.f32.mrf.mxu0 }
 0x11b   :  { %v221_v59 = vadd.f32 %v627_v56, %v220_v58 }
 0x11d   :  { %v229_v61 = vmax.f32 %v221_v59, 0.0 }
 0x11f   :  { %v232_v62 = vpack.c.bf16 %v229_v61, %v228_v60 }
 0x121   :  { %344 = vmatmul.bf16.vlgmr.msra.gmra.mxu1 %v232_v62  ;;  %363 = vmatmul.bf16.vlgmr.msra.gmra.mxu2 %v232_v62 }
 0x12c   :  { %v223_v63 = vpop.f32.mrf.mxu0 }
 0x12d   :  { %v224_v0 = vadd.f32 %v627_v56, %v223_v63 }
 0x12f   :  { %v230_v3 = vmax.f32 %v224_v0, 0.0 }
 0x134   :  { %v225_v1 = vpop.f32.mrf.mxu0 }
 0x135   :  { %v226_v2 = vadd.f32 %v627_v56, %v225_v1 }
 0x137   :  { %v231_v4 = vmax.f32 %v226_v2, 0.0 }
 0x139   :  { %v233_v5 = vpack.c.bf16 %v231_v4, %v230_v3 }
 0x13b   :  { %349 = vmatmul.bf16.vlgmr.msra.gmra.mxu3 %v233_v5  ;;  %368 = vmatmul.bf16.gmra.mxu2 %v233_v5 }
 0x19e   :  { %v345_v7 = vpop.f32.mrf.mxu1 }
 0x19f   :  { %v346_v23 = vadd.f32 %v345_v7, %v252_v15 }
 0x1a1   :  { %v374_v16 = vmax.f32 %v346_v23, 0.0 }
 0x1a4   :  { %v364_v6 = vpop.f32.mrf.mxu2 }
 0x1a5   :  { %v365_v12 = vadd.f32 %v364_v6, %v253_v10 }
 0x1a6   :  { %v347_v13 = vpop.f32.mrf.mxu1 }
 0x1a7   :  { %v375_v18 = vmax.f32 %v365_v12, 0.0  ;;  %v348_v21 = vadd.f32 %v347_v13, %v252_v15 }
 0x1a9   :  { %v376_v27 = vmax.f32 %v348_v21, 0.0 }
 0x1ab   :  { %v382_v19 = vmax.f32 %v374_v16, %v376_v27 }
 0x1ac   :  { %v366_v9 = vpop.f32.mrf.mxu2 }
 0x1ad   :  { %v367_v11 = vadd.f32 %v366_v9, %v253_v10  ;;  %v383_v17 = vrot.slane %v382_v19, 4 }
 0x1af   :  { %v377_v14 = vmax.f32 %v367_v11, 0.0  ;;  %v384_v40 = vmax.f32 %v382_v19, %v383_v17 }
 0x1b1   :  { %v389_v22 = vmax.f32 %v375_v18, %v377_v14  ;;  %v385_v45 = vrot.slane %v384_v40, 2 }
 0x1b3   :  { %v390_v28 = vrot.slane %v389_v22, 4  ;;  %v386_v51 = vmax.f32 %v384_v40, %v385_v45 }
 0x1b5   :  { %v391_v29 = vmax.f32 %v389_v22, %v390_v28  ;;  %v387_v57 = vrot.slane %v386_v51, 1 }
 0x1b7   :  { %v392_v36 = vrot.slane %v391_v29, 2  ;;  %v388_v62 = vmax.f32 %v386_v51, %v387_v57 }
 0x1b9   :  { %v393_v42 = vmax.f32 %v391_v29, %v392_v36 }
 0x1bb   :  { %v394_v48 = vrot.slane %v393_v42, 1 }
 0x1bd   :  { %v395_v54 = vmax.f32 %v393_v42, %v394_v48 }
 0x1be   :  { %v350_v24 = vpop.f32.mrf.mxu3  ;;  %v369_v25 = vpop.f32.mrf.mxu2 }
 0x1bf   :  { %v351_v30 = vadd.f32 %v350_v24, %v252_v15  ;;  %v370_v32 = vadd.f32 %v369_v25, %v253_v10  ;;  %v418_v59 = vrot.slane %v395_v54, 6 }
 0x1c1   :  { %v378_v37 = vmax.f32 %v351_v30, 0.0  ;;  %v379_v38 = vmax.f32 %v370_v32, 0.0  ;;  %v421_v1 = vsel %vm420_vm1, %v388_v62, %v418_v59 }
 0x1c6   :  { %v352_v33 = vpop.f32.mrf.mxu3  ;;  %v371_v34 = vpop.f32.mrf.mxu2 }
 0x1c7   :  { %v353_v35 = vadd.f32 %v352_v33, %v252_v15  ;;  %v372_v20 = vadd.f32 %v371_v34, %v253_v10 }
 0x1c9   :  { %v380_v26 = vmax.f32 %v353_v35, 0.0  ;;  %v381_v39 = vmax.f32 %v372_v20, 0.0 }
 0x1cb   :  { %v396_v41 = vmax.f32 %v378_v37, %v380_v26  ;;  %v403_v31 = vmax.f32 %v379_v38, %v381_v39 }
 0x1cd   :  { %v397_v43 = vrot.slane %v396_v41, 4  ;;  %v404_v44 = vrot.slane %v403_v31, 4 }
 0x1cf   :  { %v398_v46 = vmax.f32 %v396_v41, %v397_v43  ;;  %v405_v47 = vmax.f32 %v403_v31, %v404_v44 }
 0x1d1   :  { %v399_v49 = vrot.slane %v398_v46, 2  ;;  %v406_v50 = vrot.slane %v405_v47, 2 }
 0x1d3   :  { %v400_v52 = vmax.f32 %v398_v46, %v399_v49  ;;  %v407_v53 = vmax.f32 %v405_v47, %v406_v50 }
 0x1d5   :  { %v401_v55 = vrot.slane %v400_v52, 1  ;;  %v408_v56 = vrot.slane %v407_v53, 1 }
 0x1d7   :  { %v409_v58 = vmax.f32 %v407_v53, %v408_v56  ;;  %v402_v60 = vmax.f32 %v400_v52, %v401_v55 }
 0x1d9   :  { %v419_v61 = vrot.slane %v409_v58, 6 }
 0x1db   :  { %v422_v63 = vsel %vm420_vm1, %v402_v60, %v419_v61 }
 0x1dc   :  { %v427_v0 = vrot.slane %v422_v63, 7 }
 0x1de   :  { %v429_v2 = vsel %vm428_vm2, %v427_v0, %v421_v1 }
 0x1df   :  { %v431_v3 = vsel %vm430_vm3, %v427_v0, %v429_v2 }
 0x1e0   :  { %v433_v4 = vsel %vm432_vm4, %v427_v0, %v431_v3 }
 0x1e1   :  { %v435_v5 = vsel %vm434_vm5, %v427_v0, %v433_v4 }
 0x1e2   :  { %437 = vst [vmem:[#allocation2] sm:$0xf] %v435_v5 }
 0x1e9   :  { %v471_v6 = vld [vmem:[#allocation2] sm:$0xf] }
 0x1ea   :  { %472 = vst [vmem:[#allocation6] sm:$0xf] %v471_v6 }
 0x1eb   :  { %483 = dma.vmem_to_hbm [thread:$0]  %s479_s9, 64, %s481_s11, [#allocation5]  }
 0x1ec   :  { %678 = dma.done.wait [#allocation5], 64  }
 0x1ed   :  { %679 = vsyncadd [#allocation5], 4294967232 }
 0x1ee   :  { %488 = vsyncpa [#allocation4], 1 }
 0x1ef   :  { %489 = vsyncpa [#allocation5], 1 }

</bundles_post_ra>
